<compile_context>
chip_gen: v5e
topology: v5e:2x2
jax: 0.10.0
libtpu: 0.0.40
codegen_flags: <defaults>
</compile_context>

<pallas_src>
import math

import jax
import jax.numpy as jnp
from jax import lax
from jax.experimental import pallas as pl
from jax.experimental.pallas import tpu as pltpu

# Deterministic "parameters" from BCEDiceLoss.__init__ (no learnable weights).
BCE_WEIGHT = 0.5
DICE_WEIGHT = 1.0
SMOOTH = 1e-05
_LOG_CLAMP = -100.0            # torch.nn.BCELoss clamps log() at -100
_LANE = 128
_MAX_LANE_TILE = 16384         # cap on the streamed lane tile


def _vmem_limit_bytes():
    """Scoped-VMEM limit: ~3/4 of physical, capped at 96 MiB.
    v5e/v6e (128 MiB) -> 96 MiB; v7x (64 MiB) -> 48 MiB; fallback 48 MiB."""
    try:
        cap = int(pltpu.get_tpu_info().vmem_capacity_bytes)
    except Exception:
        cap = 64 * 1024 * 1024
    if cap <= 0:
        cap = 64 * 1024 * 1024
    return min((cap * 3) // 4, 96 * 1024 * 1024)


def _make_kernel(n, r, tl, cols):
    """Streaming BCE+Dice partial-sum kernel for one (n, r, tl) lane tile."""
    chunks = tl // _LANE                    # 128-lane chunks per tile (static)
    total_chunks = cols // _LANE            # valid chunks over the whole slab
    ragged = (total_chunks % chunks) != 0   # is the last tile partially valid?
    nr = n * r
    unroll = min(chunks, 8 if nr <= 32 else 4)

    def kernel(x_ref, t_ref, out_ref):
        p = pl.program_id(0)

        def body(c, carry):
            xt_p, s_p, bce_p = carry
            start = pl.multiple_of(c * _LANE, _LANE)
            # Per-chunk load + cast keeps only a few vregs live (spill fix).
            xj = x_ref[:, :, pl.ds(start, _LANE)].astype(jnp.float32)
            tj = t_ref[:, :, pl.ds(start, _LANE)].astype(jnp.float32)
            if ragged:
                # cols is a multiple of 128, so a chunk is either fully valid
                # or fully padding: one scalar predicate per chunk.  Zeroed
                # padding is neutral for both Dice sums and the clamped BCE.
                valid = (p * chunks + c) < total_chunks
                xj = jnp.where(valid, xj, 0.0)
                tj = jnp.where(valid, tj, 0.0)
            log_x = jnp.maximum(jnp.log(xj), _LOG_CLAMP)
            log_1mx = jnp.maximum(jnp.log(1.0 - xj), _LOG_CLAMP)
            xt_p = xt_p + xj * tj
            s_p = s_p + xj + tj                       # merged Dice denominator
            # 1-mul BCE:  -(t*log x + (1-t)*log(1-x))
            #           = -(log(1-x) + t*(log x - log(1-x)))
            bce_p = bce_p - log_1mx - tj * (log_x - log_1mx)
            return xt_p, s_p, bce_p

        z = jnp.zeros((n, r, _LANE), jnp.float32)
        xt_p, s_p, bce_p = lax.fori_loop(0, chunks, body, (z, z, z),
                                         unroll=unroll)

        # Lane-dense per-tile partials; cross-lane folds + the scalar combine
        # happen in the wrapper, keeping this grid axis fully parallel.
        out_ref[0, 0:nr, :] = xt_p.reshape(nr, _LANE)
        out_ref[0, nr:2 * nr, :] = s_p.reshape(nr, _LANE)
        out_ref[0, 2 * nr:3 * nr, :] = bce_p.reshape(nr, _LANE)

    return kernel


def bce_dice_loss(inp, tgt, *, lane_tile=None):
    """Forward of BCEDiceLoss(bce_weight=0.5, dice_weight=1), smooth=1e-5."""
    n = inp.shape[0]
    l = int(math.prod(inp.shape[1:]))

    x = inp.reshape(n, l)
    t = tgt.reshape(n, l)
    if t.dtype == jnp.bool_:
        t = t.astype(jnp.int8)     # keep targets narrow; cast to f32 in-kernel

    isx = jnp.dtype(x.dtype).itemsize
    ist = jnp.dtype(t.dtype).itemsize
    # dtype-dependent sublane packing (narrowest streamed dtype decides).
    r = max(8, 32 // min(isx, ist, 4))

    # Pad only to the (r, 128) tiling boundary; ragged lane tiles are masked
    # in-kernel, so cols is NOT padded up to a multiple of the lane tile.
    cols = pl.cdiv(pl.cdiv(l, r), _LANE) * _LANE
    l_pad = r * cols
    if l_pad != l:
        # TODO(synk): residual (r*128)-boundary pad is one extra XLA pass over
        # the inputs; only taken when numel is not a multiple of r*128.
        x = jnp.pad(x, ((0, 0), (0, l_pad - l)))
        t = jnp.pad(t, ((0, 0), (0, l_pad - l)))
    x = x.reshape(n, r, cols)
    t = t.reshape(n, r, cols)

    vmem_limit = _vmem_limit_bytes()
    if lane_tile is None:
        # Double-buffered (x, t) input blocks stay under ~half the VMEM limit.
        tl = (vmem_limit // 2) // (2 * n * r * (isx + ist))
        tl = max(_LANE, min(tl, _MAX_LANE_TILE))
        tl = (tl // _LANE) * _LANE
    else:
        assert lane_tile % _LANE == 0, "lane_tile must be a multiple of 128"
        tl = lane_tile
    tl = min(tl, cols)
    num_tiles = pl.cdiv(cols, tl)
    nr3 = 3 * n * r

    kernel = _make_kernel(n, r, tl, cols)

    cost = pl.CostEstimate(
        flops=11 * n * l_pad,
        transcendentals=2 * n * l_pad,
        bytes_accessed=n * l_pad * (isx + ist) + num_tiles * nr3 * _LANE * 4,
    )

    partials = pl.pallas_call(
        kernel,
        out_shape=jax.ShapeDtypeStruct((num_tiles, nr3, _LANE), jnp.float32),
        grid_spec=pltpu.PrefetchScalarGridSpec(
            num_scalar_prefetch=0,
            grid=(num_tiles,),
            in_specs=[
                # TODO(synk): sweep pipeline_mode=pl.Buffered(3) here if a
                # trace shows exposed DMA at this tile size.
                pl.BlockSpec((n, r, tl), lambda j: (0, 0, j)),
                pl.BlockSpec((n, r, tl), lambda j: (0, 0, j)),
            ],
            out_specs=pl.BlockSpec((1, nr3, _LANE), lambda j: (j, 0, 0)),
        ),
        compiler_params=pltpu.CompilerParams(
            dimension_semantics=("parallel",),   # megacore-shardable on v7x
            vmem_limit_bytes=vmem_limit,
        ),
        cost_estimate=cost,
    )(x, t)

    # Tiny combine in plain JAX: fold tiles / sublanes / lanes, then the scalar
    # dice + BCE arithmetic.
    sums = jnp.sum(partials.reshape(num_tiles, 3, n, r * _LANE), axis=(0, 3))
    xt_s, s_s, bce_s = sums[0], sums[1], sums[2]
    dice = (2.0 * xt_s + SMOOTH) / (s_s + SMOOTH)
    dice_loss = 1.0 - jnp.sum(dice) / n
    bce = jnp.sum(bce_s) / (n * l)               # mean over the UNPADDED count
    return BCE_WEIGHT * bce + DICE_WEIGHT * dice_loss


def _bce_dice_loss_ref(inp, tgt):
    """Pure-JAX reference matching the torch forward."""
    n = inp.shape[0]
    x = inp.reshape(n, -1).astype(jnp.float32)
    t = tgt.reshape(n, -1).astype(jnp.float32)
    log_x = jnp.maximum(jnp.log(x), _LOG_CLAMP)
    log_1mx = jnp.maximum(jnp.log(1.0 - x), _LOG_CLAMP)
    bce = jnp.mean(-(t * log_x + (1.0 - t) * log_1mx))
    inter = jnp.sum(x * t, axis=1)
    dice = (2.0 * inter + SMOOTH) / (jnp.sum(x, axis=1) + jnp.sum(t, axis=1) + SMOOTH)
    dice_loss = 1.0 - jnp.sum(dice) / n
    return BCE_WEIGHT * bce + DICE_WEIGHT * dice_loss


if __name__ == "__main__":
    key = jax.random.PRNGKey(0)
    ks = jax.random.split(key, 12)

    def check(x, t, rtol=1e-4, atol=1e-6, **kw):
        loss = bce_dice_loss(x, t, **kw)
        jax.block_until_ready(loss)
        ref = _bce_dice_loss_ref(x, t)
        assert jnp.allclose(loss, ref, rtol=rtol, atol=atol), (loss, ref)

    # 1) Primary spec shape (NCHW probabilities), single tile.
    x = jax.nn.sigmoid(jax.random.normal(ks[0], (2, 4, 16, 16), jnp.float32))
    t = (jax.random.uniform(ks[1], (2, 4, 16, 16)) > 0.5).astype(jnp.float32)
    check(x, t)

    # 2) Ragged numel -> wrapper (r*128)-boundary pad path.
    x = jax.nn.sigmoid(jax.random.normal(ks[2], (2, 3, 15, 15), jnp.float32))
    t = (jax.random.uniform(ks[3], (2, 3, 15, 15)) > 0.5).astype(jnp.float32)
    check(x, t)

    # 3) Multi-tile parallel grid, tiles divide evenly.
    x = jax.nn.sigmoid(jax.random.normal(ks[4], (2, 8, 32, 32), jnp.float32))
    t = (jax.random.uniform(ks[5], (2, 8, 32, 32)) > 0.5).astype(jnp.float32)
    check(x, t, lane_tile=256)

    # 4) Multi-tile grid with a RAGGED last tile (in-kernel chunk masking).
    x = jax.nn.sigmoid(jax.random.normal(ks[6], (2, 5, 32, 32), jnp.float32))
    t = (jax.random.uniform(ks[7], (2, 5, 32, 32)) > 0.5).astype(jnp.float32)
    check(x, t, lane_tile=256)

    # 5) bf16 inputs -> r=16 sublane packing, in-kernel f32 cast.
    x = jax.nn.sigmoid(jax.random.normal(ks[8], (2, 4, 16, 16), jnp.float32)
                       ).astype(jnp.bfloat16)
    t = (jax.random.uniform(ks[9], (2, 4, 16, 16)) > 0.5).astype(jnp.bfloat16)
    check(x, t, rtol=1e-3, atol=1e-5)

    # 6) Narrow integer targets -> r=32 packing, no wrapper upcast of t.
    x = jax.nn.sigmoid(jax.random.normal(ks[10], (2, 4, 16, 16), jnp.float32))
    t = (jax.random.uniform(ks[11], (2, 4, 16, 16)) > 0.5).astype(jnp.int8)
    check(x, t)

    print("KERNEL_OK")
</pallas_src>

<mosaic_0001>
module attributes {stable_mosaic.version = 11 : i64} {
  func.func @kernel(%arg0: i32, %arg1: memref<2x8x128xf32, #tpu.memory_space<vmem>>, %arg2: memref<2x8x128xf32, #tpu.memory_space<vmem>>, %arg3: memref<1x48x128xf32, #tpu.memory_space<vmem>>) attributes {dimension_semantics = [#tpu.dimension_semantics<parallel>], iteration_bounds = array<i64: 1>, scalar_prefetch = 0 : i64, scratch_operands = 0 : i64, tpu.core_type = #tpu.core_type<tc>, window_params = [{transform_indices = @transform_0, window_bounds = array<i64: 2, 8, 128>}, {transform_indices = @transform_1, window_bounds = array<i64: 2, 8, 128>}, {transform_indices = @transform_2, window_bounds = array<i64: 1, 48, 128>}]} {
    %cst = arith.constant 0.000000e+00 : f32
    %0 = vector.broadcast %cst : f32 to vector<2x8x128xf32>
    %c0_i32 = arith.constant 0 : i32
    %c128_i32 = arith.constant 128 : i32
    %1 = arith.muli %c0_i32, %c128_i32 : i32
    %2 = tpu.assume_multiple %1, 128 : i32
    %c0 = arith.constant 0 : index
    %c0_0 = arith.constant 0 : index
    %3 = arith.index_cast %2 : i32 to index
    %4 = vector.load %arg1[%c0, %c0_0, %3] : memref<2x8x128xf32, #tpu.memory_space<vmem>>, vector<2x8x128xf32>
    %c0_1 = arith.constant 0 : index
    %c0_2 = arith.constant 0 : index
    %5 = arith.index_cast %2 : i32 to index
    %6 = vector.load %arg2[%c0_1, %c0_2, %5] : memref<2x8x128xf32, #tpu.memory_space<vmem>>, vector<2x8x128xf32>
    %7 = math.log %4 : vector<2x8x128xf32>
    %cst_3 = arith.constant -1.000000e+02 : f32
    %8 = vector.broadcast %cst_3 : f32 to vector<2x8x128xf32>
    %9 = arith.maximumf %7, %8 : vector<2x8x128xf32>
    %cst_4 = arith.constant 1.000000e+00 : f32
    %10 = vector.broadcast %cst_4 : f32 to vector<2x8x128xf32>
    %11 = arith.subf %10, %4 : vector<2x8x128xf32>
    %12 = math.log %11 : vector<2x8x128xf32>
    %cst_5 = arith.constant -1.000000e+02 : f32
    %13 = vector.broadcast %cst_5 : f32 to vector<2x8x128xf32>
    %14 = arith.maximumf %12, %13 : vector<2x8x128xf32>
    %15 = arith.mulf %4, %6 : vector<2x8x128xf32>
    %16 = arith.addf %0, %15 : vector<2x8x128xf32>
    %17 = arith.addf %0, %4 : vector<2x8x128xf32>
    %18 = arith.addf %17, %6 : vector<2x8x128xf32>
    %19 = arith.subf %0, %14 : vector<2x8x128xf32>
    %20 = arith.subf %9, %14 : vector<2x8x128xf32>
    %21 = arith.mulf %6, %20 : vector<2x8x128xf32>
    %22 = arith.subf %19, %21 : vector<2x8x128xf32>
    %c1_i32 = arith.constant 1 : i32
    %23 = vector.shape_cast %16 : vector<2x8x128xf32> to vector<16x128xf32>
    %c0_6 = arith.constant 0 : index
    %c0_7 = arith.constant 0 : index
    %c0_8 = arith.constant 0 : index
    %24 = vector.load %arg3[%c0_6, %c0_7, %c0_8] : memref<1x48x128xf32, #tpu.memory_space<vmem>>, vector<1x16x128xf32>
    %25 = vector.shape_cast %24 : vector<1x16x128xf32> to vector<16x128xf32>
    %26 = vector.shape_cast %23 : vector<16x128xf32> to vector<1x16x128xf32>
    tpu.vector_store %arg3[%c0_6, %c0_7, %c0_8], %26 {strides = array<i32>} : memref<1x48x128xf32, #tpu.memory_space<vmem>>, vector<1x16x128xf32>,
    %27 = vector.shape_cast %18 : vector<2x8x128xf32> to vector<16x128xf32>
    %c0_9 = arith.constant 0 : index
    %c16 = arith.constant 16 : index
    %c0_10 = arith.constant 0 : index
    %28 = vector.load %arg3[%c0_9, %c16, %c0_10] : memref<1x48x128xf32, #tpu.memory_space<vmem>>, vector<1x16x128xf32>
    %29 = vector.shape_cast %28 : vector<1x16x128xf32> to vector<16x128xf32>
    %30 = vector.shape_cast %27 : vector<16x128xf32> to vector<1x16x128xf32>
    tpu.vector_store %arg3[%c0_9, %c16, %c0_10], %30 {strides = array<i32>} : memref<1x48x128xf32, #tpu.memory_space<vmem>>, vector<1x16x128xf32>,
    %31 = vector.shape_cast %22 : vector<2x8x128xf32> to vector<16x128xf32>
    %c0_11 = arith.constant 0 : index
    %c32 = arith.constant 32 : index
    %c0_12 = arith.constant 0 : index
    %32 = vector.load %arg3[%c0_11, %c32, %c0_12] : memref<1x48x128xf32, #tpu.memory_space<vmem>>, vector<1x16x128xf32>
    %33 = vector.shape_cast %32 : vector<1x16x128xf32> to vector<16x128xf32>
    %34 = vector.shape_cast %31 : vector<16x128xf32> to vector<1x16x128xf32>
    tpu.vector_store %arg3[%c0_11, %c32, %c0_12], %34 {strides = array<i32>} : memref<1x48x128xf32, #tpu.memory_space<vmem>>, vector<1x16x128xf32>,
    return
  }
  func.func @transform_0(%arg0: i32) -> (i32, i32, i32) {
    %c0_i32 = arith.constant 0 : i32
    %c0_i32_0 = arith.constant 0 : i32
    %c0_i32_1 = arith.constant 0 : i32
    return %c0_i32, %c0_i32_0, %arg0 : i32, i32, i32
  }
  func.func @transform_1(%arg0: i32) -> (i32, i32, i32) {
    %c0_i32 = arith.constant 0 : i32
    %c0_i32_0 = arith.constant 0 : i32
    %c0_i32_1 = arith.constant 0 : i32
    return %c0_i32, %c0_i32_0, %arg0 : i32, i32, i32
  }
  func.func @transform_2(%arg0: i32) -> (i32, i32, i32) {
    %c0_i32 = arith.constant 0 : i32
    %c0_i32_0 = arith.constant 0 : i32
    %c0_i32_1 = arith.constant 0 : i32
    return %arg0, %c0_i32, %c0_i32_0 : i32, i32, i32
  }
}

</mosaic_0001>

<bundles_post_ra>
// kernel: tpu_custom_call.1
= control target key start
LH: loop header
LB: loop body
LE: loop exit
PB: predicated region body
PF: predicated region fallthrough
CT: control target
= control target key end

     0   :  { %7 = vsyncpa [#allocation3], 0  ;;  %s233_s0 = inlined_call_operand.hbm [shape: f32[2,8,128], index: 0, kind: input, shape index: {}]   ;;  %s234_s1 = inlined_call_operand.hbm [shape: f32[2,8,128], index: 1, kind: input, shape index: {}]   ;;  %s235_s2 = inlined_call_operand.hbm [shape: f32[1,48,128], index: 2, kind: output, shape index: {}]  }
   0x1   :  { %8 = vsyncpa [#allocation6], 0 }
   0x2   :  { %9 = vsyncpa [#allocation4], 0  ;;  %s14_s11 = sshll.u32 %s233_s0, 4  ;;  %s195_s12 = smov [#allocation2]   ;;  %s15_s11 = int_to_ptr.hbm [resolvable:$true] %s14_s11 }
   0x3   :  { %s16_s13 = sshll.u32 %s195_s12, 4  ;;  %s27_s16 = sshll.u32 %s234_s1, 4  ;;  %s17_s13 = int_to_ptr.vmem [resolvable:$true] %s16_s13  ;;  %s28_s16 = int_to_ptr.hbm [resolvable:$true] %s27_s16 }
   0x4   :  { %s196_s17 = smov 128   ;;  %s197_s18 = smov 8  }
   0x5   :  { %22 = dma.hbm_to_vmem [thread:$0]  %s15_s11, 256, %s17_s13, [#allocation3], %s196_s17, %s196_s17, %s197_s18  }
   0x6   :  { %s198_s19 = smov [#allocation5]  }
   0x7   :  { %s29_s20 = sshll.u32 %s198_s19, 4  ;;  %s30_s20 = int_to_ptr.vmem [resolvable:$true] %s29_s20 }
   0x8   :  { %35 = dma.hbm_to_vmem [thread:$0]  %s28_s16, 256, %s30_s20, [#allocation6], %s196_s17, %s196_s17, %s197_s18  }
   0x9   :  { %189 = dma.done.wait [#allocation3], 256  }
   0xa   :  { %190 = vsyncadd [#allocation3], 4294967040 }
   0xb   :  { %191 = dma.done.wait [#allocation6], 256  }
   0xc   :  { %192 = vsyncadd [#allocation6], 4294967040  ;;  %v44_v0 = vld [vmem:[#allocation2] sm:$0xff]  ;;  %v46_v1 = vld [vmem:[#allocation5] sm:$0xff]  ;;  %s199_s0 = smov [#allocation7]   ;;  %s90_s23 = sshll.u32 %s235_s2, 4  ;;  %s91_s23 = int_to_ptr.hbm [resolvable:$true] %s90_s23 }
   0xd   :  { %v45_v2 = vld [vmem:[#allocation2 + $0x8] sm:$0xff]  ;;  %109 = vlog2.f32 %v44_v0  ;;  %v62_v3 = vmul.f32 %v46_v1, %v44_v0  ;;  %v47_v4 = vld [vmem:[#allocation5 + $0x8] sm:$0xff]  ;;  %v68_v5 = vadd.f32 %v46_v1, %v44_v0  ;;  %v54_v6 = vsub.f32 1.0, %v44_v0  ;;  %s88_s1 = sshll.u32 %s199_s0, 4  ;;  %s89_s1 = int_to_ptr.vmem [resolvable:$true] %s88_s1 }
   0xe   :  { %111 = vlog2.f32 %v45_v2  ;;  %v63_v7 = vmul.f32 %v47_v4, %v45_v2  ;;  %v69_v8 = vadd.f32 %v47_v4, %v45_v2  ;;  %v55_v9 = vsub.f32 1.0, %v45_v2 }
   0xf   :  { %78 = vst [vmem:[#allocation7] sm:$0xff] %v62_v3  ;;  %113 = vlog2.f32 %v54_v6 }
  0x10   :  { %79 = vst [vmem:[#allocation7 + $0x8] sm:$0xff] %v63_v7  ;;  %115 = vlog2.f32 %v55_v9 }
  0x11   :  { %80 = vst [vmem:[#allocation7 + $0x10] sm:$0xff] %v68_v5 }
  0x12   :  { %81 = vst [vmem:[#allocation7 + $0x18] sm:$0xff] %v69_v8 }
  0x13   :  { %v110_v10 = vpop.eup %109 }
  0x14   :  { %v112_v11 = vpop.eup %111  ;;  %v49_v12 = vmul.f32 0.6931472, %v110_v10 }
  0x15   :  { %v114_v13 = vpop.eup %113  ;;  %v51_v14 = vmul.f32 0.6931472, %v112_v11 }
  0x16   :  { %v116_v15 = vpop.eup %115  ;;  %v52_v16 = vmax.f32 %v49_v12, -100.0  ;;  %v57_v17 = vmul.f32 0.6931472, %v114_v13 }
  0x17   :  { %v53_v18 = vmax.f32 %v51_v14, -100.0  ;;  %v59_v19 = vmul.f32 0.6931472, %v116_v15 }
  0x18   :  { %v60_v20 = vmax.f32 %v57_v17, -100.0 }
  0x19   :  { %v61_v21 = vmax.f32 %v59_v19, -100.0 }
  0x1a   :  { %v70_v22 = vsub.f32 0.0, %v60_v20  ;;  %v72_v23 = vsub.f32 %v52_v16, %v60_v20 }
  0x1b   :  { %v71_v24 = vsub.f32 0.0, %v61_v21  ;;  %v73_v25 = vsub.f32 %v53_v18, %v61_v21 }
  0x1c   :  { %v74_v26 = vmul.f32 %v72_v23, %v46_v1 }
  0x1d   :  { %v75_v27 = vmul.f32 %v73_v25, %v47_v4 }
  0x1e   :  { %v76_v28 = vsub.f32 %v70_v22, %v74_v26 }
  0x1f   :  { %v77_v29 = vsub.f32 %v71_v24, %v75_v27 }
  0x20   :  { %82 = vst [vmem:[#allocation7 + $0x20] sm:$0xff] %v76_v28 }
  0x21   :  { %83 = vst [vmem:[#allocation7 + $0x28] sm:$0xff] %v77_v29 }
  0x22   :  { %96 = dma.vmem_to_hbm [thread:$0]  %s89_s1, 768, %s91_s23, [#allocation4], %s196_s17, %s196_s17, %s197_s18  }
  0x23   :  { %193 = dma.done.wait [#allocation4], 768  }
  0x24   :  { %194 = vsyncadd [#allocation4], 4294966528 }
  0x25   :  { %101 = vsyncpa [#allocation3], 1 }
  0x26   :  { %102 = vsyncpa [#allocation6], 1 }
  0x27   :  { %103 = vsyncpa [#allocation4], 1 }

</bundles_post_ra>
